<compile_context>
chip_gen: v7x
topology: tpu7x:2x2x1
jax: 0.10.0
libtpu: 0.0.40
codegen_flags: <defaults>
</compile_context>

<pallas_src>
import jax
import jax.numpy as jnp
from jax.experimental import pallas as pl
from jax.experimental.pallas import tpu as pltpu

IN_F, HID = 784, 400   # nn.Linear(784, 400) -> nn.Linear(400, 1)
HID_PAD = 512          # hidden dim padded to a 128-lane multiple (zero cols are inert)


def _round_up(v, m):
    return ((v + m - 1) // m) * m


def _choose_tb(B, block_rows=1024):
    """Batch tile: multiple of 8, <= block_rows, >=2 grid steps when B > 16
    (so the 'parallel' axis shards across v7x's two TensorCores), preferring a
    tile that divides B exactly so the batch pad is skipped."""
    if B <= 16:
        return _round_up(B, 8)
    cap = min(block_rows, _round_up((B + 1) // 2, 8))
    floor = max(8, cap // 4)
    for cand in range(cap, floor - 1, -8):
        if B % cand == 0:
            return cand
    return cap


def discriminator_kernel(x_ref, w1_ref, b1_ref, w2_ref, b2_ref, out_ref):
    # Cast the streamed f32 x tile to bf16 in-kernel (no wrapper-side copy),
    # then layer 1 on the MXU with f32 accumulation.
    x_bf16 = x_ref[...].astype(jnp.bfloat16)
    h = jnp.dot(x_bf16, w1_ref[...], preferred_element_type=jnp.float32)
    h = jnp.maximum(h + b1_ref[...], 0.0)                       # bias + ReLU (VPU)
    # Layer 2 (N=1): keep it off the MXU — VPU multiply + XLU lane reduction.
    # (Fused reduce; strip-mine only if a bundle dump ever shows vreg spills.)
    logit = jnp.sum(h * w2_ref[...], axis=-1, keepdims=True) + b2_ref[...]
    # Sigmoid: exp + approximate reciprocal, both served by the EUP slot.
    out_ref[...] = pl.reciprocal(1.0 + jnp.exp(-logit), approx=True).astype(out_ref.dtype)


def prepare_params(w1, b1, w2, b2):
    """One-time weight prep (pad hidden dim to 512, cast w1 to bf16).

    Call once and reuse across forward calls — this is hoisted out of the
    per-call path on purpose.
    """
    w1_p = jnp.pad(w1, ((0, 0), (0, HID_PAD - HID))).astype(jnp.bfloat16)
    b1_p = jnp.pad(b1.reshape(1, HID), ((0, 0), (0, HID_PAD - HID))).astype(jnp.float32)
    w2_row = jnp.pad(w2.reshape(1, HID), ((0, 0), (0, HID_PAD - HID))).astype(jnp.float32)
    b2_p = b2.reshape(1, 1).astype(jnp.float32)
    return w1_p, b1_p, w2_row, b2_p


def discriminator_forward(x, params, *, block_rows=1024):
    """x: [B,784] f32; params from prepare_params() -> [B,1] f32."""
    w1_p, b1_p, w2_row, b2_p = params
    B = x.shape[0]
    tb = _choose_tb(B, block_rows)
    b_pad = _round_up(B, tb)
    # Batch pad only when unavoidable (never the feature dim); zero rows are
    # independent and their outputs are sliced off below.
    x_p = x if b_pad == B else jnp.pad(x, ((0, b_pad - B), (0, 0)))

    out = pl.pallas_call(
        discriminator_kernel,
        out_shape=jax.ShapeDtypeStruct((b_pad, 1), jnp.float32),
        grid=(b_pad // tb,),
        in_specs=[
            # x streams over the batch grid as raw f32 (double-buffered by
            # Pallas); full-extent 784 last dim — no feature padding.
            pl.BlockSpec((tb, IN_F), lambda i: (i, 0)),
            # Weights / biases: same block every step -> VMEM-resident.
            pl.BlockSpec((IN_F, HID_PAD), lambda i: (0, 0)),
            pl.BlockSpec((1, HID_PAD), lambda i: (0, 0)),
            pl.BlockSpec((1, HID_PAD), lambda i: (0, 0)),
            pl.BlockSpec((1, 1), lambda i: (0, 0)),
        ],
        out_specs=pl.BlockSpec((tb, 1), lambda i: (i, 0)),
        compiler_params=pltpu.CompilerParams(
            # Batch axis is embarrassingly parallel -> megacore sharding on v7x.
            dimension_semantics=("parallel",),
            # Headroom over v5e's 16 MiB scoped default; well under every
            # chip's physical VMEM.  Footprint at tb=1024 is ~10-12 MB.
            vmem_limit_bytes=32 * 1024 * 1024,
        ),
    )(x_p, w1_p, b1_p, w2_row, b2_p)
    return out[:B] if b_pad != B else out


def init_params(key):
    """Deterministic init mimicking nn.Linear's U(-1/sqrt(fan_in), 1/sqrt(fan_in))."""
    k1, k2, k3, k4 = jax.random.split(key, 4)
    bound1 = 1.0 / jnp.sqrt(784.0)
    bound2 = 1.0 / jnp.sqrt(400.0)
    w1 = jax.random.uniform(k1, (IN_F, HID), jnp.float32, -bound1, bound1)
    b1 = jax.random.uniform(k2, (1, HID), jnp.float32, -bound1, bound1)
    w2 = jax.random.uniform(k3, (HID, 1), jnp.float32, -bound2, bound2)
    b2 = jax.random.uniform(k4, (1, 1), jnp.float32, -bound2, bound2)
    return w1, b1, w2, b2


if __name__ == "__main__":
    key = jax.random.PRNGKey(0)
    k_x, k_p = jax.random.split(key)

    batch = 2
    x = jax.random.normal(k_x, (batch, IN_F), jnp.float32)
    w1, b1, w2, b2 = init_params(k_p)

    params = prepare_params(w1, b1, w2, b2)          # one-time weight prep
    out = discriminator_forward(x, params)
    out = jax.block_until_ready(out)

    # Reference in plain JAX, mirroring the kernel's bf16-input / f32-accumulate
    # precision choice for layer 1 (intentional ~1e-3-level deviation from the
    # pure-f32 PyTorch forward; approx reciprocal adds ~2^-12 rel error).
    h_ref = jnp.maximum(
        jnp.dot(x.astype(jnp.bfloat16), w1.astype(jnp.bfloat16),
                preferred_element_type=jnp.float32) + b1, 0.0)
    ref = jax.nn.sigmoid(h_ref @ w2 + b2)

    assert out.shape == (batch, 1)
    assert jnp.allclose(out, ref, atol=2e-3, rtol=0.0), float(jnp.max(jnp.abs(out - ref)))

    print("KERNEL_OK")
</pallas_src>

<mosaic_0001>
module attributes {stable_mosaic.version = 11 : i64} {
  func.func @discriminator_kernel(%arg0: i32, %arg1: memref<8x784xf32, #tpu.memory_space<vmem>>, %arg2: memref<784x512xbf16, #tpu.memory_space<vmem>>, %arg3: memref<1x512xf32, #tpu.memory_space<vmem>>, %arg4: memref<1x512xf32, #tpu.memory_space<vmem>>, %arg5: memref<1x1xf32, #tpu.memory_space<vmem>>, %arg6: memref<8x1xf32, #tpu.memory_space<vmem>>) attributes {dimension_semantics = [#tpu.dimension_semantics<parallel>], iteration_bounds = array<i64: 1>, scalar_prefetch = 0 : i64, scratch_operands = 0 : i64, tpu.core_type = #tpu.core_type<tc>, window_params = [{transform_indices = @transform_0, window_bounds = array<i64: 8, 784>}, {pipeline_mode = #tpu.pipeline_mode<synchronous>, transform_indices = @transform_1, window_bounds = array<i64: 784, 512>}, {pipeline_mode = #tpu.pipeline_mode<synchronous>, transform_indices = @transform_2, window_bounds = array<i64: 1, 512>}, {pipeline_mode = #tpu.pipeline_mode<synchronous>, transform_indices = @transform_3, window_bounds = array<i64: 1, 512>}, {pipeline_mode = #tpu.pipeline_mode<synchronous>, transform_indices = @transform_4, window_bounds = array<i64: 1, 1>}, {transform_indices = @transform_5, window_bounds = array<i64: 8, 1>}]} {
    %c0 = arith.constant 0 : index
    %c0_0 = arith.constant 0 : index
    %0 = vector.load %arg1[%c0, %c0_0] : memref<8x784xf32, #tpu.memory_space<vmem>>, vector<8x784xf32>
    %1 = arith.truncf %0 : vector<8x784xf32> to vector<8x784xbf16>
    %c0_1 = arith.constant 0 : index
    %c0_2 = arith.constant 0 : index
    %2 = vector.load %arg2[%c0_1, %c0_2] : memref<784x512xbf16, #tpu.memory_space<vmem>>, vector<784x512xbf16>
    %cst = arith.constant dense<0.000000e+00> : vector<8x512xf32>
    %3 = tpu.matmul %1, %2, %cst {dimension_numbers = #tpu.dot_dimension_numbers<[1], [0], [0], [1], [0, 0, 1, 1], [], []>} : vector<8x784xbf16>, vector<784x512xbf16>, vector<8x512xf32> -> vector<8x512xf32>
    %c0_3 = arith.constant 0 : index
    %c0_4 = arith.constant 0 : index
    %4 = vector.load %arg3[%c0_3, %c0_4] : memref<1x512xf32, #tpu.memory_space<vmem>>, vector<1x512xf32>
    %5 = vector.broadcast %4 : vector<1x512xf32> to vector<8x512xf32>
    %6 = arith.addf %3, %5 : vector<8x512xf32>
    %cst_5 = arith.constant 0.000000e+00 : f32
    %7 = vector.broadcast %cst_5 : f32 to vector<8x512xf32>
    %8 = arith.maximumf %6, %7 : vector<8x512xf32>
    %c0_6 = arith.constant 0 : index
    %c0_7 = arith.constant 0 : index
    %9 = vector.load %arg4[%c0_6, %c0_7] : memref<1x512xf32, #tpu.memory_space<vmem>>, vector<1x512xf32>
    %10 = vector.broadcast %9 : vector<1x512xf32> to vector<8x512xf32>
    %11 = arith.mulf %8, %10 : vector<8x512xf32>
    %cst_8 = arith.constant dense<0.000000e+00> : vector<8xf32>
    %12 = vector.multi_reduction <add>, %11, %cst_8 [1] : vector<8x512xf32> to vector<8xf32>
    %13 = vector.shape_cast %12 : vector<8xf32> to vector<8x1xf32>
    %c0_9 = arith.constant 0 : index
    %c0_10 = arith.constant 0 : index
    %14 = vector.load %arg5[%c0_9, %c0_10] : memref<1x1xf32, #tpu.memory_space<vmem>>, vector<1x1xf32>
    %15 = vector.broadcast %14 : vector<1x1xf32> to vector<8x1xf32>
    %16 = arith.addf %13, %15 : vector<8x1xf32>
    %cst_11 = arith.constant 0.000000e+00 : f32
    %17 = vector.broadcast %cst_11 : f32 to vector<8x1xf32>
    %18 = arith.subf %17, %16 : vector<8x1xf32>
    %19 = math.exp %18 : vector<8x1xf32>
    %cst_12 = arith.constant 1.000000e+00 : f32
    %20 = vector.broadcast %cst_12 : f32 to vector<8x1xf32>
    %21 = arith.addf %20, %19 : vector<8x1xf32>
    %22 = tpu.reciprocal %21 {approx = true} : vector<8x1xf32> -> vector<8x1xf32>
    %c0_13 = arith.constant 0 : index
    %c0_14 = arith.constant 0 : index
    %23 = vector.load %arg6[%c0_13, %c0_14] : memref<8x1xf32, #tpu.memory_space<vmem>>, vector<8x1xf32>
    tpu.vector_store %arg6[%c0_13, %c0_14], %22 {strides = array<i32>} : memref<8x1xf32, #tpu.memory_space<vmem>>, vector<8x1xf32>,
    return
  }
  func.func @transform_0(%arg0: i32) -> (i32, i32) {
    %c0_i32 = arith.constant 0 : i32
    %c0_i32_0 = arith.constant 0 : i32
    return %arg0, %c0_i32 : i32, i32
  }
  func.func @transform_1(%arg0: i32) -> (i32, i32) {
    %c0_i32 = arith.constant 0 : i32
    %c0_i32_0 = arith.constant 0 : i32
    %c0_i32_1 = arith.constant 0 : i32
    return %c0_i32, %c0_i32_0 : i32, i32
  }
  func.func @transform_2(%arg0: i32) -> (i32, i32) {
    %c0_i32 = arith.constant 0 : i32
    %c0_i32_0 = arith.constant 0 : i32
    %c0_i32_1 = arith.constant 0 : i32
    return %c0_i32, %c0_i32_0 : i32, i32
  }
  func.func @transform_3(%arg0: i32) -> (i32, i32) {
    %c0_i32 = arith.constant 0 : i32
    %c0_i32_0 = arith.constant 0 : i32
    %c0_i32_1 = arith.constant 0 : i32
    return %c0_i32, %c0_i32_0 : i32, i32
  }
  func.func @transform_4(%arg0: i32) -> (i32, i32) {
    %c0_i32 = arith.constant 0 : i32
    %c0_i32_0 = arith.constant 0 : i32
    %c0_i32_1 = arith.constant 0 : i32
    return %c0_i32, %c0_i32_0 : i32, i32
  }
  func.func @transform_5(%arg0: i32) -> (i32, i32) {
    %c0_i32 = arith.constant 0 : i32
    %c0_i32_0 = arith.constant 0 : i32
    return %arg0, %c0_i32 : i32, i32
  }
}

</mosaic_0001>

<bundles_post_ra>
// kernel: tpu_custom_call.1
= control target key start
LH: loop header
LB: loop body
LE: loop exit
PB: predicated region body
PF: predicated region fallthrough
CT: control target
= control target key end

     0   :  { %s2305_s0 = inlined_call_operand.hbm [shape: f32[8,784], index: 0, kind: input, shape index: {}]   ;;  %s2306_s1 = inlined_call_operand.hbm [shape: bf16[784,512], index: 1, kind: input, shape index: {}]   ;;  %s2307_s2 = inlined_call_operand.vmem [shape: f32[1,512], index: 2, kind: input, shape index: {}]   ;;  %s2308_s3 = inlined_call_operand.vmem [shape: f32[1,512], index: 3, kind: input, shape index: {}]   ;;  %s2309_s4 = inlined_call_operand.<no memory space> [shape: f32[1,1], index: 4, kind: input, shape index: {}]   ;;  %s2310_s5 = inlined_call_operand.vmem [shape: f32[8,1], index: 5, kind: output, shape index: {}]  }
   0x1   :  { %v10_v0 = vstv %s2309_s4 }
   0x2   :  { %11 = vst [vmem:[#allocation2] sm:$0x1] %v10_v0 }
   0x3   :  { %12 = vsyncpa [#allocation4], 0 }
   0x4   :  { %13 = vsyncpa [#allocation6], 0  ;;  %s2227_s20 = smov [#allocation3]   ;;  %s2228_s22 = smov [#allocation5]  }
   0x5   :  { %s20_s21 = sshll.u32 %s2227_s20, 4  ;;  %s29_s23 = sshll.u32 %s2228_s22, 4  ;;  %s21_s21 = int_to_ptr.vmem [resolvable:$true] %s20_s21  ;;  %s2265_s23 = int_to_ptr.vmem [resolvable:$true] %s29_s23 }
   0x6   :  { %s2179_s26 = scalar_lea.hbm %s2305_s0, 896 }
   0x7   :  { %p2180_p0 = scmp.ne.s32.totalorder %s2305_s0, %s2179_s26  ;;  %p2183_p1 = scmp.lt.u32.totalorder %s2179_s26, %s2305_s0 }
   0x9   :  { %p2185_p2 = pnand %p2183_p1, %p2180_p0 }
   0xb   :  { %2188 = shalt.err (!%p2185_p2)
}
   0xc   :  { %s2189_s30 = scalar_lea.vmem %s21_s21, 896  ;;  %p2194_p4 = scmp.lt.s32.totalorder %s21_s21, %s21_s21 }
   0xd   :  { %p2190_p3 = scmp.ne.s32.totalorder %s21_s21, %s2189_s30  ;;  %p2195_p5 = scmp.lt.s32.totalorder %s2189_s30, %s2189_s30 }
   0xf   :  { %p2196_p6 = por %p2195_p5, %p2194_p4 }
  0x11   :  { %p2197_p7 = pnand %p2196_p6, %p2190_p3 }
  0x13   :  { %2200 = shalt.err (!%p2197_p7)
}
  0x14   :  { %23 = dma.hbm_to_vmem [thread:$0]  %s2305_s0, 896, %s21_s21, [#allocation4]  }
  0x15   :  { %s2201_s10 = scalar_lea.hbm %s2306_s1, 25088 }
  0x16   :  { %p2202_p8 = scmp.ne.s32.totalorder %s2306_s1, %s2201_s10  ;;  %p2205_p9 = scmp.lt.u32.totalorder %s2201_s10, %s2306_s1 }
  0x18   :  { %p2207_p10 = pnand %p2205_p9, %p2202_p8 }
  0x1a   :  { %2210 = shalt.err (!%p2207_p10)
}
  0x1b   :  { %s2211_s15 = scalar_lea.vmem %s2265_s23, 25088  ;;  %p2216_p12 = scmp.lt.s32.totalorder %s2265_s23, %s2265_s23 }
  0x1c   :  { %p2212_p11 = scmp.ne.s32.totalorder %s2265_s23, %s2211_s15  ;;  %p2217_p13 = scmp.lt.s32.totalorder %s2211_s15, %s2211_s15 }
  0x1e   :  { %p2218_p0 = por %p2217_p13, %p2216_p12 }
  0x20   :  { %p2219_p1 = pnand %p2218_p0, %p2212_p11 }
  0x22   :  { %2222 = shalt.err (!%p2219_p1)
}
  0x23   :  { %s2229_s0 = smov 256   ;;  %s2230_s16 = smov 16  }
  0x24   :  { %35 = dma.hbm_to_vmem [thread:$0]  %s2306_s1, 25088, %s2265_s23, [#allocation6], %s2229_s0, %s2229_s0, %s2230_s16  }
  0x25   :  { %2223 = dma.done.wait [#allocation4], 896  }
  0x26   :  { %2224 = vsyncadd [#allocation4], 4294966400 }
  0x27   :  { %2225 = dma.done.wait [#allocation6], 25088  }
  0x28   :  { %2226 = vsyncadd [#allocation6], 4294942208  ;;  %v1881_v1 = vld [vmem:[#allocation5 + $0x4] ss:$16 sps:$4 sm:$0xff]   ;;  %v1883_v2 = vld [vmem:[#allocation5 + $0xc] ss:$16 sps:$4 sm:$0xff]  }
  0x29   :  { %1265 = vmatprep.subr.bf16.mxu0 %v1881_v1  ;;  %v1885_v3 = vld [vmem:[#allocation5] ss:$16 sps:$4 sm:$0xff]   ;;  %v1886_v4 = vld [vmem:[#allocation5 + $0x8] ss:$16 sps:$4 sm:$0xff]   ;;  %1429 = vmatprep.subr.bf16.mxu1 %v1883_v2  ;;  %v1887_v5 = vld [vmem:[#allocation5 + $0x24] ss:$16 sps:$4 sm:$0xff]  }
  0x2a   :  { %1266 = vmatpush1.bf16.msra.mxu0 %v1885_v3  ;;  %1430 = vmatpush1.bf16.msra.mxu1 %v1886_v4  ;;  %v1889_v6 = vld [vmem:[#allocation5 + $0x2c] ss:$16 sps:$4 sm:$0xff]   ;;  %v1891_v7 = vld [vmem:[#allocation5 + $0x20] ss:$16 sps:$4 sm:$0xff]   ;;  %v1892_v8 = vld [vmem:[#allocation5 + $0x28] ss:$16 sps:$4 sm:$0xff]  }
  0x2b   :  { %1267 = vmatprep.subr.bf16.mxu0 %v1887_v5  ;;  %1431 = vmatprep.subr.bf16.mxu1 %v1889_v6  ;;  %v1893_v9 = vld [vmem:[#allocation5 + $0x44] ss:$16 sps:$4 sm:$0xff]   ;;  %v1895_v10 = vld [vmem:[#allocation5 + $0x4c] ss:$16 sps:$4 sm:$0xff]   ;;  %v1897_v11 = vld [vmem:[#allocation5 + $0x40] ss:$16 sps:$4 sm:$0xff]  }
  0x2c   :  { %v1898_v12 = vld [vmem:[#allocation5 + $0x48] ss:$16 sps:$4 sm:$0xff]   ;;  %v1899_v13 = vld [vmem:[#allocation5 + $0x64] ss:$16 sps:$4 sm:$0xff]   ;;  %v1901_v14 = vld [vmem:[#allocation5 + $0x6c] ss:$16 sps:$4 sm:$0xff]  }
  0x2d   :  { %v1903_v15 = vld [vmem:[#allocation5 + $0x60] ss:$16 sps:$4 sm:$0xff]   ;;  %v1904_v16 = vld [vmem:[#allocation5 + $0x68] ss:$16 sps:$4 sm:$0xff]   ;;  %v1905_v17 = vld [vmem:[#allocation5 + $0x84] ss:$16 sps:$4 sm:$0xff]  }
  0x2e   :  { %1268 = vmatpush1.bf16.msra.mxu0 %v1891_v7  ;;  %1432 = vmatpush1.bf16.msra.mxu1 %v1892_v8  ;;  %v1907_v18 = vld [vmem:[#allocation5 + $0x8c] ss:$16 sps:$4 sm:$0xff]   ;;  %v1909_v19 = vld [vmem:[#allocation5 + $0x80] ss:$16 sps:$4 sm:$0xff]   ;;  %v1910_v20 = vld [vmem:[#allocation5 + $0x88] ss:$16 sps:$4 sm:$0xff]  }
  0x2f   :  { %1269 = vmatprep.subr.bf16.mxu0 %v1893_v9  ;;  %1433 = vmatprep.subr.bf16.mxu1 %v1895_v10  ;;  %v1911_v21 = vld [vmem:[#allocation5 + $0xa4] ss:$16 sps:$4 sm:$0xff]   ;;  %v1913_v22 = vld [vmem:[#allocation5 + $0xac] ss:$16 sps:$4 sm:$0xff]   ;;  %v1915_v23 = vld [vmem:[#allocation5 + $0xa0] ss:$16 sps:$4 sm:$0xff]  }
  0x30   :  { %v1916_v24 = vld [vmem:[#allocation5 + $0xa8] ss:$16 sps:$4 sm:$0xff]   ;;  %v1917_v25 = vld [vmem:[#allocation5 + $0xc4] ss:$16 sps:$4 sm:$0xff]   ;;  %v1919_v26 = vld [vmem:[#allocation5 + $0xcc] ss:$16 sps:$4 sm:$0xff]  }
  0x31   :  { %v1921_v27 = vld [vmem:[#allocation5 + $0xc0] ss:$16 sps:$4 sm:$0xff]   ;;  %v1922_v28 = vld [vmem:[#allocation5 + $0xc8] ss:$16 sps:$4 sm:$0xff]   ;;  %v1923_v29 = vld [vmem:[#allocation5 + $0xe4] ss:$16 sps:$4 sm:$0xff]  }
  0x32   :  { %1270 = vmatpush1.bf16.msra.mxu0 %v1897_v11  ;;  %1434 = vmatpush1.bf16.msra.mxu1 %v1898_v12  ;;  %v1925_v30 = vld [vmem:[#allocation5 + $0xec] ss:$16 sps:$4 sm:$0xff]   ;;  %v1927_v31 = vld [vmem:[#allocation5 + $0xe0] ss:$16 sps:$4 sm:$0xff]   ;;  %v1928_v32 = vld [vmem:[#allocation5 + $0xe8] ss:$16 sps:$4 sm:$0xff]  }
  0x33   :  { %1271 = vmatprep.subr.bf16.mxu0 %v1899_v13  ;;  %1435 = vmatprep.subr.bf16.mxu1 %v1901_v14  ;;  %v1929_v33 = vld [vmem:[#allocation5 + $0x104] ss:$16 sps:$4 sm:$0xff]   ;;  %v1931_v34 = vld [vmem:[#allocation5 + $0x10c] ss:$16 sps:$4 sm:$0xff]   ;;  %v1933_v35 = vld [vmem:[#allocation5 + $0x100] ss:$16 sps:$4 sm:$0xff]  }
  0x34   :  { %v1934_v36 = vld [vmem:[#allocation5 + $0x108] ss:$16 sps:$4 sm:$0xff]   ;;  %v1935_v37 = vld [vmem:[#allocation5 + $0x124] ss:$16 sps:$4 sm:$0xff]   ;;  %v1937_v38 = vld [vmem:[#allocation5 + $0x12c] ss:$16 sps:$4 sm:$0xff]  }
  0x35   :  { %v1939_v39 = vld [vmem:[#allocation5 + $0x120] ss:$16 sps:$4 sm:$0xff]   ;;  %v1940_v40 = vld [vmem:[#allocation5 + $0x128] ss:$16 sps:$4 sm:$0xff]   ;;  %v1941_v41 = vld [vmem:[#allocation5 + $0x144] ss:$16 sps:$4 sm:$0xff]  }
  0x36   :  { %1272 = vmatpush1.bf16.msra.mxu0 %v1903_v15  ;;  %1436 = vmatpush1.bf16.msra.mxu1 %v1904_v16  ;;  %v1943_v42 = vld [vmem:[#allocation5 + $0x14c] ss:$16 sps:$4 sm:$0xff]   ;;  %v1945_v43 = vld [vmem:[#allocation5 + $0x140] ss:$16 sps:$4 sm:$0xff]   ;;  %v1946_v44 = vld [vmem:[#allocation5 + $0x148] ss:$16 sps:$4 sm:$0xff]  }
  0x37   :  { %1273 = vmatprep.subr.bf16.mxu0 %v1905_v17  ;;  %1437 = vmatprep.subr.bf16.mxu1 %v1907_v18  ;;  %v1947_v45 = vld [vmem:[#allocation5 + $0x164] ss:$16 sps:$4 sm:$0xff]   ;;  %v1949_v46 = vld [vmem:[#allocation5 + $0x16c] ss:$16 sps:$4 sm:$0xff]   ;;  %v1951_v48 = vld [vmem:[#allocation5 + $0x160] ss:$16 sps:$4 sm:$0xff]  }
  0x38   :  { %v50_v47 = vld [vmem:[#allocation3 + $0x8] sm:$0xff]  ;;  %v1952_v50 = vld [vmem:[#allocation5 + $0x168] ss:$16 sps:$4 sm:$0xff]   ;;  %v1955_v52 = vld [vmem:[#allocation5 + $0x18c] ss:$16 sps:$4 sm:$0xff]   ;;  %vm1261_vm0 = vcmask 130048  }
  0x39   :  { %v57_v49 = vpack.c.bf16 %v50_v47, %v50_v47  ;;  %v1953_v51 = vld [vmem:[#allocation5 + $0x184] ss:$16 sps:$4 sm:$0xff]   ;;  %v1957_v53 = vld [vmem:[#allocation5 + $0x180] ss:$16 sps:$4 sm:$0xff]   ;;  %v1958_v54 = vld [vmem:[#allocation5 + $0x188] ss:$16 sps:$4 sm:$0xff]  }
  0x3a   :  { %1274 = vmatpush1.bf16.msra.mxu0 %v1909_v19  ;;  %1438 = vmatpush1.bf16.msra.mxu1 %v1910_v20  ;;  %v1959_v55 = vld [vmem:[#allocation5 + $0x1a4] ss:$16 sps:$4 sm:$0xff]   ;;  %v1961_v56 = vld [vmem:[#allocation5 + $0x1ac] ss:$16 sps:$4 sm:$0xff]   ;;  %v1963_v57 = vld [vmem:[#allocation5 + $0x1a0] ss:$16 sps:$4 sm:$0xff]  }
  0x3b   :  { %1275 = vmatprep.subr.bf16.mxu0 %v1911_v21  ;;  %1439 = vmatprep.subr.bf16.mxu1 %v1913_v22  ;;  %v1964_v58 = vld [vmem:[#allocation5 + $0x1a8] ss:$16 sps:$4 sm:$0xff]   ;;  %v1965_v59 = vld [vmem:[#allocation5 + $0x1c4] ss:$16 sps:$4 sm:$0xff]   ;;  %v1967_v60 = vld [vmem:[#allocation5 + $0x1cc] ss:$16 sps:$4 sm:$0xff]  }
  0x3c   :  { %1297 = vmatprep.mubr.bf16.mxu0 %v57_v49  ;;  %1461 = vmatprep.mubr.bf16.mxu1 %v57_v49  ;;  %v1969_v61 = vld [vmem:[#allocation5 + $0x1c0] ss:$16 sps:$4 sm:$0xff]   ;;  %v1970_v62 = vld [vmem:[#allocation5 + $0x1c8] ss:$16 sps:$4 sm:$0xff]   ;;  %v1971_v63 = vld [vmem:[#allocation5 + $0x1e4] ss:$16 sps:$4 sm:$0xff]  }
  0x3d   :  { %v1973_v0 = vld [vmem:[#allocation5 + $0x1ec] ss:$16 sps:$4 sm:$0xff]   ;;  %v1975_v1 = vld [vmem:[#allocation5 + $0x1e0] ss:$16 sps:$4 sm:$0xff]   ;;  %v1976_v2 = vld [vmem:[#allocation5 + $0x1e8] ss:$16 sps:$4 sm:$0xff]  }
  0x3e   :  { %1276 = vmatpush1.bf16.msra.mxu0 %v1915_v23  ;;  %1440 = vmatpush1.bf16.msra.mxu1 %v1916_v24  ;;  %v49_v3 = vld [vmem:[#allocation3] sm:$0xff]  ;;  %v1979_v4 = vld [vmem:[#allocation5 + $0x204] ss:$16 sps:$4 sm:$0xff]   ;;  %v1977_v7 = vld [vmem:[#allocation5 + $0x200] ss:$16 sps:$4 sm:$0xff]   ;;  %vm1641_vm1 = vcmask 7168  }
  0x3f   :  { %1277 = vmatprep.subr.bf16.mxu0 %v1917_v25  ;;  %1441 = vmatprep.subr.bf16.mxu1 %v1919_v26  ;;  %v1982_v5 = vld [vmem:[#allocation5 + $0x20c] ss:$16 sps:$4 sm:$0xff]   ;;  %v56_v6 = vpack.c.bf16 %v49_v3, %v49_v3  ;;  %v1980_v8 = vld [vmem:[#allocation5 + $0x208] ss:$16 sps:$4 sm:$0xff]   ;;  %v1985_v9 = vld [vmem:[#allocation5 + $0x224] ss:$16 sps:$4 sm:$0xff]  }
  0x40   :  { %v1988_v10 = vld [vmem:[#allocation5 + $0x22c] ss:$16 sps:$4 sm:$0xff]   ;;  %v1983_v11 = vld [vmem:[#allocation5 + $0x220] ss:$16 sps:$4 sm:$0xff]   ;;  %v1986_v12 = vld [vmem:[#allocation5 + $0x228] ss:$16 sps:$4 sm:$0xff]  }
  0x41   :  { %v1991_v13 = vld [vmem:[#allocation5 + $0x244] ss:$16 sps:$4 sm:$0xff]   ;;  %v1994_v14 = vld [vmem:[#allocation5 + $0x24c] ss:$16 sps:$4 sm:$0xff]   ;;  %v1989_v15 = vld [vmem:[#allocation5 + $0x240] ss:$16 sps:$4 sm:$0xff]  }
  0x42   :  { %1278 = vmatpush1.bf16.msra.mxu0 %v1921_v27  ;;  %1442 = vmatpush1.bf16.msra.mxu1 %v1922_v28  ;;  %v1992_v16 = vld [vmem:[#allocation5 + $0x248] ss:$16 sps:$4 sm:$0xff]   ;;  %v1997_v17 = vld [vmem:[#allocation5 + $0x264] ss:$16 sps:$4 sm:$0xff]   ;;  %v2000_v18 = vld [vmem:[#allocation5 + $0x26c] ss:$16 sps:$4 sm:$0xff]  }
  0x43   :  { %1279 = vmatprep.subr.bf16.mxu0 %v1923_v29  ;;  %1443 = vmatprep.subr.bf16.mxu1 %v1925_v30  ;;  %v1995_v19 = vld [vmem:[#allocation5 + $0x260] ss:$16 sps:$4 sm:$0xff]   ;;  %v1998_v20 = vld [vmem:[#allocation5 + $0x268] ss:$16 sps:$4 sm:$0xff]   ;;  %v2003_v21 = vld [vmem:[#allocation5 + $0x284] ss:$16 sps:$4 sm:$0xff]  }
  0x44   :  { %v2006_v22 = vld [vmem:[#allocation5 + $0x28c] ss:$16 sps:$4 sm:$0xff]   ;;  %v2001_v23 = vld [vmem:[#allocation5 + $0x280] ss:$16 sps:$4 sm:$0xff]   ;;  %v2004_v24 = vld [vmem:[#allocation5 + $0x288] ss:$16 sps:$4 sm:$0xff]  }
  0x45   :  { %v2009_v25 = vld [vmem:[#allocation5 + $0x2a4] ss:$16 sps:$4 sm:$0xff]   ;;  %v2012_v26 = vld [vmem:[#allocation5 + $0x2ac] ss:$16 sps:$4 sm:$0xff]   ;;  %v2007_v27 = vld [vmem:[#allocation5 + $0x2a0] ss:$16 sps:$4 sm:$0xff]  }
  0x46   :  { %1280 = vmatpush1.bf16.msra.mxu0 %v1927_v31  ;;  %1444 = vmatpush1.bf16.msra.mxu1 %v1928_v32  ;;  %v2010_v28 = vld [vmem:[#allocation5 + $0x2a8] ss:$16 sps:$4 sm:$0xff]   ;;  %v2015_v29 = vld [vmem:[#allocation5 + $0x2c4] ss:$16 sps:$4 sm:$0xff]   ;;  %v2018_v30 = vld [vmem:[#allocation5 + $0x2cc] ss:$16 sps:$4 sm:$0xff]  }
  0x47   :  { %1281 = vmatprep.subr.bf16.mxu0 %v1929_v33  ;;  %1445 = vmatprep.subr.bf16.mxu1 %v1931_v34  ;;  %v52_v31 = vld [vmem:[#allocation3 + $0x18] sm:$0xff]  ;;  %v2016_v34 = vld [vmem:[#allocation5 + $0x2c8] ss:$16 sps:$4 sm:$0xff]  }
  0x48   :  { %v2013_v32 = vld [vmem:[#allocation5 + $0x2c0] ss:$16 sps:$4 sm:$0xff]   ;;  %v59_v33 = vpack.c.bf16 %v52_v31, %v52_v31  ;;  %v2039_v47 = vld [vmem:[#allocation5 + $0x344] ss:$16 sps:$4 sm:$0xff]  }
  0x49   :  { %v2037_v49 = vld [vmem:[#allocation5 + $0x340] ss:$16 sps:$4 sm:$0xff]   ;;  %v2069_v3 = vld [vmem:[#allocation5 + $0x3e4] ss:$16 sps:$4 sm:$0xff]  }
  0x4a   :  { %1282 = vmatpush1.bf16.msra.mxu0 %v1933_v35  ;;  %1446 = vmatpush1.bf16.msra.mxu1 %v1934_v36  ;;  %v2021_v35 = vld [vmem:[#allocation5 + $0x2e4] ss:$16 sps:$4 sm:$0xff]   ;;  %v2024_v36 = vld [vmem:[#allocation5 + $0x2ec] ss:$16 sps:$4 sm:$0xff]  }
  0x4b   :  { %1283 = vmatprep.subr.bf16.mxu0 %v1935_v37  ;;  %1447 = vmatprep.subr.bf16.mxu1 %v1937_v38  ;;  %v2019_v37 = vld [vmem:[#allocation5 + $0x2e0] ss:$16 sps:$4 sm:$0xff]   ;;  %v2022_v38 = vld [vmem:[#allocation5 + $0x2e8] ss:$16 sps:$4 sm:$0xff]   ;;  %v2105_v31 = vld [vmem:[#allocation5 + $0x4a4] ss:$16 sps:$4 sm:$0xff]  }
  0x4e   :  { %1284 = vmatpush1.bf16.msra.mxu0 %v1939_v39  ;;  %1448 = vmatpush1.bf16.msra.mxu1 %v1940_v40  ;;  %v2027_v39 = vld [vmem:[#allocation5 + $0x304] ss:$16 sps:$4 sm:$0xff]   ;;  %v2030_v40 = vld [vmem:[#allocation5 + $0x30c] ss:$16 sps:$4 sm:$0xff]  }
  0x4f   :  { %1285 = vmatprep.subr.bf16.mxu0 %v1941_v41  ;;  %1449 = vmatprep.subr.bf16.mxu1 %v1943_v42  ;;  %v2025_v41 = vld [vmem:[#allocation5 + $0x300] ss:$16 sps:$4 sm:$0xff]   ;;  %v2028_v42 = vld [vmem:[#allocation5 + $0x308] ss:$16 sps:$4 sm:$0xff]  }
  0x52   :  { %1286 = vmatpush1.bf16.msra.mxu0 %v1945_v43  ;;  %1450 = vmatpush1.bf16.msra.mxu1 %v1946_v44  ;;  %v2033_v43 = vld [vmem:[#allocation5 + $0x324] ss:$16 sps:$4 sm:$0xff]   ;;  %v2036_v44 = vld [vmem:[#allocation5 + $0x32c] ss:$16 sps:$4 sm:$0xff]  }
  0x53   :  { %1287 = vmatprep.subr.bf16.mxu0 %v1947_v45  ;;  %1451 = vmatprep.subr.bf16.mxu1 %v1949_v46  ;;  %v2031_v45 = vld [vmem:[#allocation5 + $0x320] ss:$16 sps:$4 sm:$0xff]   ;;  %v2034_v46 = vld [vmem:[#allocation5 + $0x328] ss:$16 sps:$4 sm:$0xff]  }
  0x56   :  { %1288 = vmatpush1.bf16.msra.mxu0 %v1951_v48  ;;  %1452 = vmatpush1.bf16.msra.mxu1 %v1952_v50  ;;  %v2042_v48 = vld [vmem:[#allocation5 + $0x34c] ss:$16 sps:$4 sm:$0xff]   ;;  %v2040_v50 = vld [vmem:[#allocation5 + $0x348] ss:$16 sps:$4 sm:$0xff]  }
  0x57   :  { %1289 = vmatprep.subr.bf16.mxu0 %v1953_v51  ;;  %1453 = vmatprep.subr.bf16.mxu1 %v1955_v52  ;;  %v2045_v51 = vld [vmem:[#allocation5 + $0x364] ss:$16 sps:$4 sm:$0xff]   ;;  %v2048_v52 = vld [vmem:[#allocation5 + $0x36c] ss:$16 sps:$4 sm:$0xff]  }
  0x5a   :  { %1290 = vmatpush1.bf16.msra.mxu0 %v1957_v53  ;;  %1454 = vmatpush1.bf16.msra.mxu1 %v1958_v54  ;;  %v2043_v53 = vld [vmem:[#allocation5 + $0x360] ss:$16 sps:$4 sm:$0xff]   ;;  %v2046_v54 = vld [vmem:[#allocation5 + $0x368] ss:$16 sps:$4 sm:$0xff]  }
  0x5b   :  { %1291 = vmatprep.subr.bf16.mxu0 %v1959_v55  ;;  %1455 = vmatprep.subr.bf16.mxu1 %v1961_v56  ;;  %v2051_v55 = vld [vmem:[#allocation5 + $0x384] ss:$16 sps:$4 sm:$0xff]   ;;  %v2054_v56 = vld [vmem:[#allocation5 + $0x38c] ss:$16 sps:$4 sm:$0xff]  }
  0x5e   :  { %1292 = vmatpush1.bf16.msra.mxu0 %v1963_v57  ;;  %1456 = vmatpush1.bf16.msra.mxu1 %v1964_v58  ;;  %v2049_v57 = vld [vmem:[#allocation5 + $0x380] ss:$16 sps:$4 sm:$0xff]   ;;  %v2052_v58 = vld [vmem:[#allocation5 + $0x388] ss:$16 sps:$4 sm:$0xff]  }
  0x5f   :  { %1293 = vmatprep.subr.bf16.mxu0 %v1965_v59  ;;  %1457 = vmatprep.subr.bf16.mxu1 %v1967_v60  ;;  %v2057_v59 = vld [vmem:[#allocation5 + $0x3a4] ss:$16 sps:$4 sm:$0xff]   ;;  %v2060_v60 = vld [vmem:[#allocation5 + $0x3ac] ss:$16 sps:$4 sm:$0xff]  }
  0x62   :  { %1294 = vmatpush1.bf16.msra.mxu0 %v1969_v61  ;;  %1458 = vmatpush1.bf16.msra.mxu1 %v1970_v62  ;;  %v2055_v61 = vld [vmem:[#allocation5 + $0x3a0] ss:$16 sps:$4 sm:$0xff]   ;;  %v2058_v62 = vld [vmem:[#allocation5 + $0x3a8] ss:$16 sps:$4 sm:$0xff]  }
  0x63   :  { %1295 = vmatprep.subr.bf16.mxu0 %v1971_v63  ;;  %1459 = vmatprep.subr.bf16.mxu1 %v1973_v0  ;;  %v2063_v63 = vld [vmem:[#allocation5 + $0x3c4] ss:$16 sps:$4 sm:$0xff]   ;;  %v2066_v0 = vld [vmem:[#allocation5 + $0x3cc] ss:$16 sps:$4 sm:$0xff]  }
  0x66   :  { %1296 = vmatpush1.bf16.msra.mxu0 %v1975_v1  ;;  %1460 = vmatpush1.bf16.msra.mxu1 %v1976_v2  ;;  %v2061_v1 = vld [vmem:[#allocation5 + $0x3c0] ss:$16 sps:$4 sm:$0xff]   ;;  %v2064_v2 = vld [vmem:[#allocation5 + $0x3c8] ss:$16 sps:$4 sm:$0xff]  }
  0x67   :  { %1306 = vmatprep.subr.bf16.mxu0 %v1979_v4  ;;  %1470 = vmatprep.subr.bf16.mxu1 %v1982_v5  ;;  %v2072_v4 = vld [vmem:[#allocation5 + $0x3ec] ss:$16 sps:$4 sm:$0xff]   ;;  %v2067_v5 = vld [vmem:[#allocation5 + $0x3e0] ss:$16 sps:$4 sm:$0xff]  }
  0x69   :  { %1298 = vmatmul.mubr.bf16.vlgmr.msra.gmra.mrb[0].mxu0 %v56_v6  ;;  %1462 = vmatmul.mubr.bf16.vlgmr.msra.gmra.mrb[0].mxu1 %v56_v6  ;;  %v2070_v6 = vld [vmem:[#allocation5 + $0x3e8] ss:$16 sps:$4 sm:$0xff]  }
  0x6a   :  { %1307 = vmatpush1.bf16.msra.mxu0 %v1977_v7  ;;  %1471 = vmatpush1.bf16.msra.mxu1 %v1980_v8  ;;  %v2075_v7 = vld [vmem:[#allocation5 + $0x404] ss:$16 sps:$4 sm:$0xff]   ;;  %v51_v8 = vld [vmem:[#allocation3 + $0x10] sm:$0xff] }
  0x6b   :  { %1308 = vmatprep.subr.bf16.mxu0 %v1985_v9  ;;  %1472 = vmatprep.subr.bf16.mxu1 %v1988_v10  ;;  %v2078_v9 = vld [vmem:[#allocation5 + $0x40c] ss:$16 sps:$4 sm:$0xff]   ;;  %v2073_v10 = vld [vmem:[#allocation5 + $0x400] ss:$16 sps:$4 sm:$0xff]  }
  0x6c   :  { %1338 = vmatprep.mubr.bf16.mxu0 %v59_v33  ;;  %1502 = vmatprep.mubr.bf16.mxu1 %v59_v33  ;;  %v2103_v33 = vld [vmem:[#allocation5 + $0x4a0] ss:$16 sps:$4 sm:$0xff]  }
  0x6e   :  { %1309 = vmatpush1.bf16.msra.mxu0 %v1983_v11  ;;  %1473 = vmatpush1.bf16.msra.mxu1 %v1986_v12  ;;  %v58_v11 = vpack.c.bf16 %v51_v8, %v51_v8  ;;  %v2076_v12 = vld [vmem:[#allocation5 + $0x408] ss:$16 sps:$4 sm:$0xff]   ;;  %v2168_v8 = vld [vmem:[#allocation5 + $0x5ec] ss:$16 sps:$4 sm:$0xff]  }
  0x6f   :  { %1310 = vmatprep.subr.bf16.mxu0 %v1991_v13  ;;  %1474 = vmatprep.subr.bf16.mxu1 %v1994_v14  ;;  %v2081_v13 = vld [vmem:[#allocation5 + $0x424] ss:$16 sps:$4 sm:$0xff]   ;;  %v2084_v14 = vld [vmem:[#allocation5 + $0x42c] ss:$16 sps:$4 sm:$0xff]  }
  0x72   :  { %1311 = vmatpush1.bf16.msra.mxu0 %v1989_v15  ;;  %1475 = vmatpush1.bf16.msra.mxu1 %v1992_v16  ;;  %v54_v15 = vld [vmem:[#allocation3 + $0x28] sm:$0xff] }
  0x73   :  { %1312 = vmatprep.subr.bf16.mxu0 %v1997_v17  ;;  %1476 = vmatprep.subr.bf16.mxu1 %v2000_v18  ;;  %v61_v16 = vpack.c.bf16 %v54_v15, %v54_v15  ;;  %v2079_v17 = vld [vmem:[#allocation5 + $0x420] ss:$16 sps:$4 sm:$0xff]   ;;  %v2082_v18 = vld [vmem:[#allocation5 + $0x428] ss:$16 sps:$4 sm:$0xff]  }
  0x74   :  { %v2169_v15 = vld [vmem:[#allocation5 + $0x600] ss:$16 sps:$4 sm:$0xff]  }
  0x76   :  { %1313 = vmatpush1.bf16.msra.mxu0 %v1995_v19  ;;  %1477 = vmatpush1.bf16.msra.mxu1 %v1998_v20  ;;  %v2087_v19 = vld [vmem:[#allocation5 + $0x444] ss:$16 sps:$4 sm:$0xff]   ;;  %v2090_v20 = vld [vmem:[#allocation5 + $0x44c] ss:$16 sps:$4 sm:$0xff]  }
  0x77   :  { %1314 = vmatprep.subr.bf16.mxu0 %v2003_v21  ;;  %1478 = vmatprep.subr.bf16.mxu1 %v2006_v22  ;;  %v2085_v21 = vld [vmem:[#allocation5 + $0x440] ss:$16 sps:$4 sm:$0xff]   ;;  %v2088_v22 = vld [vmem:[#allocation5 + $0x448] ss:$16 sps:$4 sm:$0xff]  }
  0x7a   :  { %1315 = vmatpush1.bf16.msra.mxu0 %v2001_v23  ;;  %1479 = vmatpush1.bf16.msra.mxu1 %v2004_v24  ;;  %v2093_v23 = vld [vmem:[#allocation5 + $0x464] ss:$16 sps:$4 sm:$0xff]   ;;  %v2096_v24 = vld [vmem:[#allocation5 + $0x46c] ss:$16 sps:$4 sm:$0xff]  }
  0x7b   :  { %1316 = vmatprep.subr.bf16.mxu0 %v2009_v25  ;;  %1480 = vmatprep.subr.bf16.mxu1 %v2012_v26  ;;  %v2091_v25 = vld [vmem:[#allocation5 + $0x460] ss:$16 sps:$4 sm:$0xff]   ;;  %v2094_v26 = vld [vmem:[#allocation5 + $0x468] ss:$16 sps:$4 sm:$0xff]  }
  0x7e   :  { %1317 = vmatpush1.bf16.msra.mxu0 %v2007_v27  ;;  %1481 = vmatpush1.bf16.msra.mxu1 %v2010_v28  ;;  %v2099_v27 = vld [vmem:[#allocation5 + $0x484] ss:$16 sps:$4 sm:$0xff]   ;;  %v2102_v28 = vld [vmem:[#allocation5 + $0x48c] ss:$16 sps:$4 sm:$0xff]  }
  0x7f   :  { %1318 = vmatprep.subr.bf16.mxu0 %v2015_v29  ;;  %1482 = vmatprep.subr.bf16.mxu1 %v2018_v30  ;;  %v2097_v29 = vld [vmem:[#allocation5 + $0x480] ss:$16 sps:$4 sm:$0xff]   ;;  %v2100_v30 = vld [vmem:[#allocation5 + $0x488] ss:$16 sps:$4 sm:$0xff]  }
  0x82   :  { %1319 = vmatpush1.bf16.msra.mxu0 %v2013_v32  ;;  %1483 = vmatpush1.bf16.msra.mxu1 %v2016_v34  ;;  %v2108_v32 = vld [vmem:[#allocation5 + $0x4ac] ss:$16 sps:$4 sm:$0xff]   ;;  %v2106_v34 = vld [vmem:[#allocation5 + $0x4a8] ss:$16 sps:$4 sm:$0xff]  }
  0x83   :  { %1320 = vmatprep.subr.bf16.mxu0 %v2021_v35  ;;  %1484 = vmatprep.subr.bf16.mxu1 %v2024_v36  ;;  %v2111_v35 = vld [vmem:[#allocation5 + $0x4c4] ss:$16 sps:$4 sm:$0xff]   ;;  %v2114_v36 = vld [vmem:[#allocation5 + $0x4cc] ss:$16 sps:$4 sm:$0xff]  }
  0x86   :  { %1321 = vmatpush1.bf16.msra.mxu0 %v2019_v37  ;;  %1485 = vmatpush1.bf16.msra.mxu1 %v2022_v38  ;;  %v2109_v37 = vld [vmem:[#allocation5 + $0x4c0] ss:$16 sps:$4 sm:$0xff]   ;;  %v2112_v38 = vld [vmem:[#allocation5 + $0x4c8] ss:$16 sps:$4 sm:$0xff]  }
  0x87   :  { %1322 = vmatprep.subr.bf16.mxu0 %v2027_v39  ;;  %1486 = vmatprep.subr.bf16.mxu1 %v2030_v40  ;;  %v2117_v39 = vld [vmem:[#allocation5 + $0x4e4] ss:$16 sps:$4 sm:$0xff]   ;;  %v2120_v40 = vld [vmem:[#allocation5 + $0x4ec] ss:$16 sps:$4 sm:$0xff]  }
  0x8a   :  { %1323 = vmatpush1.bf16.msra.mxu0 %v2025_v41  ;;  %1487 = vmatpush1.bf16.msra.mxu1 %v2028_v42  ;;  %v2115_v41 = vld [vmem:[#allocation5 + $0x4e0] ss:$16 sps:$4 sm:$0xff]   ;;  %v2118_v42 = vld [vmem:[#allocation5 + $0x4e8] ss:$16 sps:$4 sm:$0xff]  }
  0x8b   :  { %1324 = vmatprep.subr.bf16.mxu0 %v2033_v43  ;;  %1488 = vmatprep.subr.bf16.mxu1 %v2036_v44  ;;  %v2123_v43 = vld [vmem:[#allocation5 + $0x504] ss:$16 sps:$4 sm:$0xff]   ;;  %v2126_v44 = vld [vmem:[#allocation5 + $0x50c] ss:$16 sps:$4 sm:$0xff]  }
  0x8e   :  { %1325 = vmatpush1.bf16.msra.mxu0 %v2031_v45  ;;  %1489 = vmatpush1.bf16.msra.mxu1 %v2034_v46  ;;  %v2121_v45 = vld [vmem:[#allocation5 + $0x500] ss:$16 sps:$4 sm:$0xff]   ;;  %v2124_v46 = vld [vmem:[#allocation5 + $0x508] ss:$16 sps:$4 sm:$0xff]  }
  0x8f   :  { %1326 = vmatprep.subr.bf16.mxu0 %v2039_v47  ;;  %1490 = vmatprep.subr.bf16.mxu1 %v2042_v48  ;;  %v2129_v47 = vld [vmem:[#allocation5 + $0x524] ss:$16 sps:$4 sm:$0xff]   ;;  %v2132_v48 = vld [vmem:[#allocation5 + $0x52c] ss:$16 sps:$4 sm:$0xff]  }
  0x92   :  { %1327 = vmatpush1.bf16.msra.mxu0 %v2037_v49  ;;  %1491 = vmatpush1.bf16.msra.mxu1 %v2040_v50  ;;  %v2127_v49 = vld [vmem:[#allocation5 + $0x520] ss:$16 sps:$4 sm:$0xff]   ;;  %v2130_v50 = vld [vmem:[#allocation5 + $0x528] ss:$16 sps:$4 sm:$0xff]  }
  0x93   :  { %1328 = vmatprep.subr.bf16.mxu0 %v2045_v51  ;;  %1492 = vmatprep.subr.bf16.mxu1 %v2048_v52  ;;  %v2135_v51 = vld [vmem:[#allocation5 + $0x544] ss:$16 sps:$4 sm:$0xff]   ;;  %v2138_v52 = vld [vmem:[#allocation5 + $0x54c] ss:$16 sps:$4 sm:$0xff]  }
  0x96   :  { %1329 = vmatpush1.bf16.msra.mxu0 %v2043_v53  ;;  %1493 = vmatpush1.bf16.msra.mxu1 %v2046_v54  ;;  %v2133_v53 = vld [vmem:[#allocation5 + $0x540] ss:$16 sps:$4 sm:$0xff]   ;;  %v2136_v54 = vld [vmem:[#allocation5 + $0x548] ss:$16 sps:$4 sm:$0xff]  }
  0x97   :  { %1330 = vmatprep.subr.bf16.mxu0 %v2051_v55  ;;  %1494 = vmatprep.subr.bf16.mxu1 %v2054_v56  ;;  %v2141_v55 = vld [vmem:[#allocation5 + $0x564] ss:$16 sps:$4 sm:$0xff]   ;;  %v2144_v56 = vld [vmem:[#allocation5 + $0x56c] ss:$16 sps:$4 sm:$0xff]  }
  0x9a   :  { %1331 = vmatpush1.bf16.msra.mxu0 %v2049_v57  ;;  %1495 = vmatpush1.bf16.msra.mxu1 %v2052_v58  ;;  %v2139_v57 = vld [vmem:[#allocation5 + $0x560] ss:$16 sps:$4 sm:$0xff]   ;;  %v2142_v58 = vld [vmem:[#allocation5 + $0x568] ss:$16 sps:$4 sm:$0xff]  }
  0x9b   :  { %1332 = vmatprep.subr.bf16.mxu0 %v2057_v59  ;;  %1496 = vmatprep.subr.bf16.mxu1 %v2060_v60  ;;  %v2147_v59 = vld [vmem:[#allocation5 + $0x584] ss:$16 sps:$4 sm:$0xff]   ;;  %v2150_v60 = vld [vmem:[#allocation5 + $0x58c] ss:$16 sps:$4 sm:$0xff]  }
  0x9e   :  { %1333 = vmatpush1.bf16.msra.mxu0 %v2055_v61  ;;  %1497 = vmatpush1.bf16.msra.mxu1 %v2058_v62  ;;  %v2145_v61 = vld [vmem:[#allocation5 + $0x580] ss:$16 sps:$4 sm:$0xff]   ;;  %v2148_v62 = vld [vmem:[#allocation5 + $0x588] ss:$16 sps:$4 sm:$0xff]  }
  0x9f   :  { %1334 = vmatprep.subr.bf16.mxu0 %v2063_v63  ;;  %1498 = vmatprep.subr.bf16.mxu1 %v2066_v0  ;;  %v2153_v63 = vld [vmem:[#allocation5 + $0x5a4] ss:$16 sps:$4 sm:$0xff]   ;;  %v2156_v0 = vld [vmem:[#allocation5 + $0x5ac] ss:$16 sps:$4 sm:$0xff]  }
  0xa2   :  { %1335 = vmatpush1.bf16.msra.mxu0 %v2061_v1  ;;  %1499 = vmatpush1.bf16.msra.mxu1 %v2064_v2  ;;  %v2151_v1 = vld [vmem:[#allocation5 + $0x5a0] ss:$16 sps:$4 sm:$0xff]   ;;  %v2154_v2 = vld [vmem:[#allocation5 + $0x5a8] ss:$16 sps:$4 sm:$0xff]  }
  0xa3   :  { %1336 = vmatprep.subr.bf16.mxu0 %v2069_v3  ;;  %1500 = vmatprep.subr.bf16.mxu1 %v2072_v4  ;;  %v2159_v3 = vld [vmem:[#allocation5 + $0x5c4] ss:$16 sps:$4 sm:$0xff]   ;;  %v2162_v4 = vld [vmem:[#allocation5 + $0x5cc] ss:$16 sps:$4 sm:$0xff]  }
  0xa6   :  { %1337 = vmatpush1.bf16.msra.mxu0 %v2067_v5  ;;  %1501 = vmatpush1.bf16.msra.mxu1 %v2070_v6  ;;  %v2157_v5 = vld [vmem:[#allocation5 + $0x5c0] ss:$16 sps:$4 sm:$0xff]   ;;  %v2160_v6 = vld [vmem:[#allocation5 + $0x5c8] ss:$16 sps:$4 sm:$0xff]  }
  0xa7   :  { %1347 = vmatprep.subr.bf16.mxu0 %v2075_v7  ;;  %1511 = vmatprep.subr.bf16.mxu1 %v2078_v9  ;;  %v2165_v7 = vld [vmem:[#allocation5 + $0x5e4] ss:$16 sps:$4 sm:$0xff]   ;;  %v2163_v9 = vld [vmem:[#allocation5 + $0x5e0] ss:$16 sps:$4 sm:$0xff]  }
  0xa9   :  { %1339 = vmatmul.mubr.bf16.vlgmr.msra.gmra.mrb[0].mxu0 %v58_v11  ;;  %1503 = vmatmul.mubr.bf16.vlgmr.msra.gmra.mrb[0].mxu1 %v58_v11  ;;  %v53_v11 = vld [vmem:[#allocation3 + $0x20] sm:$0xff] }
  0xaa   :  { %1348 = vmatpush1.bf16.msra.mxu0 %v2073_v10  ;;  %1512 = vmatpush1.bf16.msra.mxu1 %v2076_v12  ;;  %v2166_v10 = vld [vmem:[#allocation5 + $0x5e8] ss:$16 sps:$4 sm:$0xff]   ;;  %v2171_v12 = vld [vmem:[#allocation5 + $0x604] ss:$16 sps:$4 sm:$0xff]  }
  0xab   :  { %1349 = vmatprep.subr.bf16.mxu0 %v2081_v13  ;;  %1513 = vmatprep.subr.bf16.mxu1 %v2084_v14  ;;  %v2174_v13 = vld [vmem:[#allocation5 + $0x60c] ss:$16 sps:$4 sm:$0xff]   ;;  %v60_v14 = vpack.c.bf16 %v53_v11, %v53_v11 }
  0xac   :  { %1379 = vmatprep.mubr.bf16.mxu0 %v61_v16  ;;  %1543 = vmatprep.mubr.bf16.mxu1 %v61_v16  ;;  %v2172_v16 = vld [vmem:[#allocation5 + $0x608] ss:$16 sps:$4 sm:$0xff]  }
  0xae   :  { %1350 = vmatpush1.bf16.msra.mxu0 %v2079_v17  ;;  %1514 = vmatpush1.bf16.msra.mxu1 %v2082_v18  ;;  %v2231_v17 = vmov 0   ;;  %v55_v18 = vld [vmem:[#allocation3 + $0x30] sm:$0xff] }
  0xaf   :  { %1351 = vmatprep.subr.bf16.mxu0 %v2087_v19  ;;  %1515 = vmatprep.subr.bf16.mxu1 %v2090_v20  ;;  %v62_v19 = vpack.c.bf16 %v55_v18, %v55_v18  ;;  %v261_v20 = vlaneseq }
  0xb2   :  { %1352 = vmatpush1.bf16.msra.mxu0 %v2085_v21  ;;  %1516 = vmatpush1.bf16.msra.mxu1 %v2088_v22  ;;  %v262_v21 = vshrl.u32 %v261_v20, 7 }
  0xb3   :  { %1353 = vmatprep.subr.bf16.mxu0 %v2093_v23  ;;  %1517 = vmatprep.subr.bf16.mxu1 %v2096_v24  ;;  %v259_v24 = vld [vmem:[%s2307_s2] sm:$0xf] }
  0xb4   :  { %v263_v22 = vsub.s32 0, %v262_v21  ;;  %v271_v23 = vsub.s32 2, %v262_v21 }
  0xb6   :  { %1354 = vmatpush1.bf16.msra.mxu0 %v2091_v25  ;;  %1518 = vmatpush1.bf16.msra.mxu1 %v2094_v26  ;;  %v267_v25 = vsub.s32 1, %v262_v21  ;;  %v275_v26 = vsub.s32 3, %v262_v21 }
  0xb7   :  { %1355 = vmatprep.subr.bf16.mxu0 %v2099_v27  ;;  %1519 = vmatprep.subr.bf16.mxu1 %v2102_v28  ;;  %v264_v27 = vrot.slane %v259_v24, %v263_v22  ;;  %v272_v28 = vrot.slane %v259_v24, %v271_v23 }
  0xba   :  { %1356 = vmatpush1.bf16.msra.mxu0 %v2097_v29  ;;  %1520 = vmatpush1.bf16.msra.mxu1 %v2100_v30  ;;  %v1597_v29 = vld [vmem:[%s2308_s3] sm:$0xf]  ;;  %v268_v30 = vrot.slane %v259_v24, %v267_v25 }
  0xbb   :  { %1357 = vmatprep.subr.bf16.mxu0 %v2105_v31  ;;  %1521 = vmatprep.subr.bf16.mxu1 %v2108_v32  ;;  %v276_v31 = vrot.slane %v259_v24, %v275_v26 }
  0xbe   :  { %1358 = vmatpush1.bf16.msra.mxu0 %v2103_v33  ;;  %1522 = vmatpush1.bf16.msra.mxu1 %v2106_v34 }
  0xbf   :  { %1359 = vmatprep.subr.bf16.mxu0 %v2111_v35  ;;  %1523 = vmatprep.subr.bf16.mxu1 %v2114_v36  ;;  %v1602_v35 = vrot.slane %v1597_v29, %v263_v22 }
  0xc2   :  { %1360 = vmatpush1.bf16.msra.mxu0 %v2109_v37  ;;  %1524 = vmatpush1.bf16.msra.mxu1 %v2112_v38 }
  0xc3   :  { %1361 = vmatprep.subr.bf16.mxu0 %v2117_v39  ;;  %1525 = vmatprep.subr.bf16.mxu1 %v2120_v40  ;;  %v1606_v40 = vrot.slane %v1597_v29, %v267_v25 }
  0xc6   :  { %1362 = vmatpush1.bf16.msra.mxu0 %v2115_v41  ;;  %1526 = vmatpush1.bf16.msra.mxu1 %v2118_v42 }
  0xc7   :  { %1363 = vmatprep.subr.bf16.mxu0 %v2123_v43  ;;  %1527 = vmatprep.subr.bf16.mxu1 %v2126_v44 }
  0xca   :  { %1364 = vmatpush1.bf16.msra.mxu0 %v2121_v45  ;;  %1528 = vmatpush1.bf16.msra.mxu1 %v2124_v46 }
  0xcb   :  { %1365 = vmatprep.subr.bf16.mxu0 %v2129_v47  ;;  %1529 = vmatprep.subr.bf16.mxu1 %v2132_v48  ;;  %v1610_v48 = vrot.slane %v1597_v29, %v271_v23 }
  0xce   :  { %1366 = vmatpush1.bf16.msra.mxu0 %v2127_v49  ;;  %1530 = vmatpush1.bf16.msra.mxu1 %v2130_v50 }
  0xcf   :  { %1367 = vmatprep.subr.bf16.mxu0 %v2135_v51  ;;  %1531 = vmatprep.subr.bf16.mxu1 %v2138_v52 }
  0xd2   :  { %1368 = vmatpush1.bf16.msra.mxu0 %v2133_v53  ;;  %1532 = vmatpush1.bf16.msra.mxu1 %v2136_v54  ;;  %v1614_v53 = vrot.slane %v1597_v29, %v275_v26 }
  0xd3   :  { %1369 = vmatprep.subr.bf16.mxu0 %v2141_v55  ;;  %1533 = vmatprep.subr.bf16.mxu1 %v2144_v56 }
  0xd6   :  { %1370 = vmatpush1.bf16.msra.mxu0 %v2139_v57  ;;  %1534 = vmatpush1.bf16.msra.mxu1 %v2142_v58 }
  0xd7   :  { %1371 = vmatprep.subr.bf16.mxu0 %v2147_v59  ;;  %1535 = vmatprep.subr.bf16.mxu1 %v2150_v60  ;;  %v1847_v59 = vld [vmem:[#allocation2] ss:$0 sm:$0xff] }
  0xda   :  { %1372 = vmatpush1.bf16.msra.mxu0 %v2145_v61  ;;  %1536 = vmatpush1.bf16.msra.mxu1 %v2148_v62 }
  0xdb   :  { %1373 = vmatprep.subr.bf16.mxu0 %v2153_v63  ;;  %1537 = vmatprep.subr.bf16.mxu1 %v2156_v0 }
  0xde   :  { %1374 = vmatpush1.bf16.msra.mxu0 %v2151_v1  ;;  %1538 = vmatpush1.bf16.msra.mxu1 %v2154_v2 }
  0xdf   :  { %1375 = vmatprep.subr.bf16.mxu0 %v2159_v3  ;;  %1539 = vmatprep.subr.bf16.mxu1 %v2162_v4 }
  0xe2   :  { %1376 = vmatpush1.bf16.msra.mxu0 %v2157_v5  ;;  %1540 = vmatpush1.bf16.msra.mxu1 %v2160_v6 }
  0xe3   :  { %1377 = vmatprep.subr.bf16.mxu0 %v2165_v7  ;;  %1541 = vmatprep.subr.bf16.mxu1 %v2168_v8 }
  0xe6   :  { %1378 = vmatpush1.bf16.msra.mxu0 %v2163_v9  ;;  %1542 = vmatpush1.bf16.msra.mxu1 %v2166_v10 }
  0xe7   :  { %1388 = vmatprep.subr.bf16.mxu0 %v2171_v12  ;;  %1552 = vmatprep.subr.bf16.mxu1 %v2174_v13 }
  0xe9   :  { %1380 = vmatmul.mubr.bf16.vlgmr.msra.gmra.mrb[0].mxu0 %v60_v14  ;;  %1544 = vmatmul.mubr.bf16.vlgmr.msra.gmra.mrb[0].mxu1 %v60_v14 }
  0xea   :  { %1389 = vmatpush1.bf16.msra.mxu0 %v2169_v15  ;;  %1553 = vmatpush1.bf16.msra.mxu1 %v2172_v16 }
  0xeb   :  { %1420 = vmatprep.mubr.bf16.mxu0 %v2231_v17  ;;  %1584 = vmatprep.mubr.bf16.mxu1 %v2231_v17 }
  0xf5   :  { %1845 = vmatmul.mubr.msk.bf16.vlgmr.msra.gmra.mrb[0].mxu0 %vm1261_vm0, %v62_v19  ;;  %1846 = vmatmul.mubr.msk.bf16.vlgmr.msra.gmra.mrb[0].mxu1 %vm1261_vm0, %v62_v19 }
 0x1c8   :  { %v1422_v32 = vpop.f32.mrb[0].mxu0  ;;  %v1586_v33 = vpop.f32.mrb[0].mxu1 }
 0x1c9   :  { %v1848_v34 = vadd.f32 %v1422_v32, %v264_v27  ;;  %v1850_v36 = vadd.f32 %v1586_v33, %v272_v28  ;;  %v1424_v37 = vpop.f32.mrb[1].mxu0  ;;  %v1588_v38 = vpop.f32.mrb[1].mxu1 }
 0x1ca   :  { %v1849_v39 = vadd.f32 %v1424_v37, %v268_v30  ;;  %v1851_v41 = vadd.f32 %v1588_v38, %v276_v31  ;;  %v1426_v42 = vpop.f32.mrb[2].mxu0  ;;  %v1590_v43 = vpop.f32.mrb[2].mxu1 }
 0x1cb   :  { %v1593_v44 = vmax.f32 %v1848_v34, 0.0  ;;  %v1427_v45 = vpop.f32.mrb[3].mxu0  ;;  %v1591_v46 = vpop.f32.mrb[3].mxu1  ;;  %v1595_v47 = vmax.f32 %v1850_v36, 0.0 }
 0x1cc   :  { %v1594_v49 = vmax.f32 %v1849_v39, 0.0  ;;  %v1596_v52 = vmax.f32 %v1851_v41, 0.0 }
 0x1cd   :  { %v1619_v50 = vmul.f32 %v1602_v35, %v1593_v44  ;;  %v1621_v54 = vmul.f32 %v1610_v48, %v1595_v47 }
 0x1ce   :  { %v1620_v51 = vmul.f32 %v1606_v40, %v1594_v49  ;;  %v1622_v56 = vmul.f32 %v1614_v53, %v1596_v52 }
 0x1d0   :  { %v1623_v55 = vadd.f32 %v1620_v51, %v1619_v50 }
 0x1d2   :  { %v1624_v57 = vadd.f32 %v1623_v55, %v1621_v54 }
 0x1d4   :  { %v1625_v58 = vadd.f32 %v1624_v57, %v1622_v56 }
 0x1d6   :  { %1626 = vadd.xlane.f32.xlu0 %v1625_v58 }
 0x263   :  { %v1627_v60 = vpop.xlane.xlu0 %1626 }
 0x264   :  { %v1635_v61 = vadd.f32 %v1847_v59, %v1627_v60 }
 0x266   :  { %v1636_v62 = vsub.f32 0.0, %v1635_v61 }
 0x268   :  { %v1637_v63 = vmul.f32 1.442695, %v1636_v62 }
 0x26a   :  { %2175 = vpow2.f32 %v1637_v63 }
 0x274   :  { %v2176_v0 = vpop.eup %2175 }
 0x275   :  { %v1639_v1 = vadd.f32 1.0, %v2176_v0 }
 0x277   :  { %2177 = vrcp.f32 %v1639_v1 }
 0x281   :  { %v2178_v2 = vpop.eup %2177 }
 0x282   :  { %1642 = vst.msk [vmem:[%s2310_s5] sm:$0xff] %vm1641_vm1, %v2178_v2 }
 0x283   :  { %1647 = vsyncpa [#allocation4], 1 }
 0x284   :  { %1648 = vsyncpa [#allocation6], 1 }

</bundles_post_ra>
